<compile_context>
chip_gen: v6e
topology: v6e:2x2x1
jax: 0.10.0
libtpu: 0.0.40
codegen_flags: <defaults>
</compile_context>

<pallas_src>
import functools

import jax
import jax.numpy as jnp
from jax.experimental import pallas as pl
from jax.experimental.pallas import tpu as pltpu

_VMEM_LIMIT = 48 * 1024 * 1024      # explicit budget; stays under v7x's 64 MiB/TC
_COMPUTE_DTYPE = jnp.bfloat16


def _pick_tile(dim, candidates):
    """Largest candidate tile that evenly divides `dim`, else the whole dim."""
    for c in candidates:
        if dim >= c and dim % c == 0:
            return c
    return dim


# ---------------------------------------------------------------------------
# Kernels
# ---------------------------------------------------------------------------
def _matmul_bias_kernel(x_ref, w_ref, b_ref, o_ref, acc_ref):
    # Tiled x @ w + b with f32 accumulation over the K grid axis (P3 pattern).
    @pl.when(pl.program_id(2) == 0)
    def _():
        acc_ref[...] = jnp.zeros_like(acc_ref)

    acc_ref[...] += jnp.dot(x_ref[...], w_ref[...],
                            preferred_element_type=jnp.float32)

    @pl.when(pl.program_id(2) == pl.num_programs(2) - 1)
    def _():
        o_ref[...] = (acc_ref[...] + b_ref[...].astype(jnp.float32)).astype(o_ref.dtype)


def _proj_add_ln_kernel(x_ref, w_ref, b_ref, res_ref, g_ref, be_ref, o_ref):
    # out_proj + residual add + LayerNorm fused; statistics in f32.
    y = jnp.dot(x_ref[...], w_ref[...], preferred_element_type=jnp.float32)
    y = y + b_ref[...].astype(jnp.float32) + res_ref[...].astype(jnp.float32)
    mean = jnp.mean(y, axis=-1, keepdims=True)
    var = jnp.mean(jnp.square(y - mean), axis=-1, keepdims=True)
    yn = (y - mean) * jax.lax.rsqrt(var + 1e-5)
    o_ref[...] = (yn * g_ref[...].astype(jnp.float32)
                  + be_ref[...].astype(jnp.float32)).astype(o_ref.dtype)


def _ffn_add_ln_kernel(x_ref, w1_ref, b1_ref, w2_ref, b2_ref, g_ref, be_ref,
                       o_ref, acc_ref):
    # linear -> ReLU -> linear, accumulated over hidden-dim chunks, then
    # residual add + LayerNorm in the finalize step.
    h_idx = pl.program_id(1)

    @pl.when(h_idx == 0)
    def _():
        acc_ref[...] = jnp.zeros_like(acc_ref)

    h = jnp.dot(x_ref[...], w1_ref[...], preferred_element_type=jnp.float32)
    h = jnp.maximum(h + b1_ref[...].astype(jnp.float32), 0.0)   # ReLU
    acc_ref[...] += jnp.dot(h.astype(w2_ref.dtype), w2_ref[...],
                            preferred_element_type=jnp.float32)

    @pl.when(h_idx == pl.num_programs(1) - 1)
    def _():
        y = (acc_ref[...] + b2_ref[...].astype(jnp.float32)
             + x_ref[...].astype(jnp.float32))                  # + residual (FFN input)
        mean = jnp.mean(y, axis=-1, keepdims=True)
        var = jnp.mean(jnp.square(y - mean), axis=-1, keepdims=True)
        yn = (y - mean) * jax.lax.rsqrt(var + 1e-5)
        o_ref[...] = (yn * g_ref[...].astype(jnp.float32)
                      + be_ref[...].astype(jnp.float32)).astype(o_ref.dtype)


def _mha_kernel(qkv_ref, o_ref, *, num_heads, head_dim, scale):
    # One batch element per grid step; all heads handled in-kernel so the
    # output block stays lane-dense (last dim = d_model) and no wrapper-side
    # head transposes are needed.
    d_model = num_heads * head_dim
    qkv = qkv_ref[0]                                            # (S, 3*d_model)
    outs = []
    for h in range(num_heads):                                  # static unroll
        lo = h * head_dim
        qh = qkv[:, lo:lo + head_dim]
        kh = qkv[:, d_model + lo:d_model + lo + head_dim]
        vh = qkv[:, 2 * d_model + lo:2 * d_model + lo + head_dim]
        # QK^T without materializing k.T: contract K's last dim directly.
        s = jax.lax.dot_general(qh, kh, (((1,), (1,)), ((), ())),
                                preferred_element_type=jnp.float32) * scale
        m = jnp.max(s, axis=-1, keepdims=True)
        e = jnp.exp(s - m)
        p = e * pl.reciprocal(jnp.sum(e, axis=-1, keepdims=True), approx=True)
        outs.append(jnp.dot(p.astype(vh.dtype), vh,
                            preferred_element_type=jnp.float32))
    o_ref[0] = jnp.concatenate(outs, axis=-1).astype(o_ref.dtype)
    # TODO(synk): for long sequences, tile over KV blocks (flash-style online
    # softmax with m/l/acc scratch) instead of materializing the full SxS scores.


# ---------------------------------------------------------------------------
# pallas_call wrappers
# ---------------------------------------------------------------------------
def pallas_matmul_bias(x, w, b):
    M, K = x.shape
    Kw, N = w.shape
    assert K == Kw
    tm = _pick_tile(M, (256, 128))
    tn = _pick_tile(N, (512, 256))
    tk = _pick_tile(K, (512, 256))
    grid = (M // tm, N // tn, K // tk)
    return pl.pallas_call(
        _matmul_bias_kernel,
        out_shape=jax.ShapeDtypeStruct((M, N), x.dtype),
        grid_spec=pltpu.PrefetchScalarGridSpec(
            num_scalar_prefetch=0,
            grid=grid,
            in_specs=[
                pl.BlockSpec((tm, tk), lambda i, j, k: (i, k)),
                pl.BlockSpec((tk, tn), lambda i, j, k: (k, j)),
                pl.BlockSpec((1, tn), lambda i, j, k: (0, j)),
            ],
            out_specs=pl.BlockSpec((tm, tn), lambda i, j, k: (i, j)),
            scratch_shapes=[pltpu.VMEM((tm, tn), jnp.float32)],
        ),
        compiler_params=pltpu.CompilerParams(
            dimension_semantics=("parallel", "parallel", "arbitrary"),
            vmem_limit_bytes=_VMEM_LIMIT,
        ),
    )(x, w, b)


def pallas_proj_add_layernorm(x, w, b, residual, gamma, beta):
    M, K = x.shape
    _, N = w.shape               # N == d_model (full row needed for LayerNorm)
    tm = _pick_tile(M, (256, 128))
    return pl.pallas_call(
        _proj_add_ln_kernel,
        out_shape=jax.ShapeDtypeStruct((M, N), x.dtype),
        grid=(M // tm,),
        in_specs=[
            pl.BlockSpec((tm, K), lambda i: (i, 0)),
            pl.BlockSpec((K, N), lambda i: (0, 0)),
            pl.BlockSpec((1, N), lambda i: (0, 0)),
            pl.BlockSpec((tm, N), lambda i: (i, 0)),
            pl.BlockSpec((1, N), lambda i: (0, 0)),
            pl.BlockSpec((1, N), lambda i: (0, 0)),
        ],
        out_specs=pl.BlockSpec((tm, N), lambda i: (i, 0)),
        compiler_params=pltpu.CompilerParams(
            dimension_semantics=("parallel",),
            vmem_limit_bytes=_VMEM_LIMIT,
        ),
    )(x, w, b, residual, gamma, beta)


def pallas_ffn_add_layernorm(x, w1, b1, w2, b2, gamma, beta):
    M, D = x.shape
    _, Hff = w1.shape
    tm = _pick_tile(M, (256, 128))
    th = _pick_tile(Hff, (512, 256))
    grid = (M // tm, Hff // th)
    return pl.pallas_call(
        _ffn_add_ln_kernel,
        out_shape=jax.ShapeDtypeStruct((M, D), x.dtype),
        grid_spec=pltpu.PrefetchScalarGridSpec(
            num_scalar_prefetch=0,
            grid=grid,
            in_specs=[
                pl.BlockSpec((tm, D), lambda i, h: (i, 0)),
                pl.BlockSpec((D, th), lambda i, h: (0, h)),
                pl.BlockSpec((1, th), lambda i, h: (0, h)),
                pl.BlockSpec((th, D), lambda i, h: (h, 0)),
                pl.BlockSpec((1, D), lambda i, h: (0, 0)),
                pl.BlockSpec((1, D), lambda i, h: (0, 0)),
                pl.BlockSpec((1, D), lambda i, h: (0, 0)),
            ],
            out_specs=pl.BlockSpec((tm, D), lambda i, h: (i, 0)),
            scratch_shapes=[pltpu.VMEM((tm, D), jnp.float32)],
        ),
        compiler_params=pltpu.CompilerParams(
            dimension_semantics=("parallel", "arbitrary"),
            vmem_limit_bytes=_VMEM_LIMIT,
        ),
    )(x, w1, b1, w2, b2, gamma, beta)


def pallas_mha(qkv, num_heads, head_dim):
    B, S, threeD = qkv.shape
    D = num_heads * head_dim
    kern = functools.partial(_mha_kernel, num_heads=num_heads, head_dim=head_dim,
                             scale=1.0 / float(head_dim) ** 0.5)
    return pl.pallas_call(
        kern,
        out_shape=jax.ShapeDtypeStruct((B, S, D), qkv.dtype),
        grid=(B,),
        in_specs=[pl.BlockSpec((1, S, threeD), lambda b: (b, 0, 0))],
        out_specs=pl.BlockSpec((1, S, D), lambda b: (b, 0, 0)),
        compiler_params=pltpu.CompilerParams(
            dimension_semantics=("parallel",),
            vmem_limit_bytes=_VMEM_LIMIT,
        ),
    )(qkv)


# ---------------------------------------------------------------------------
# Transformer encoder forward (PyTorch nn.TransformerEncoder semantics)
# ---------------------------------------------------------------------------
def init_params(key, input_dim, num_heads, hidden_dim, num_layers):
    params = []
    for _ in range(num_layers):
        key, *ks = jax.random.split(key, 9)
        scale = 0.05
        layer = dict(
            wqkv=jax.random.normal(ks[0], (input_dim, 3 * input_dim), jnp.float32) * scale,
            bqkv=jax.random.normal(ks[1], (1, 3 * input_dim), jnp.float32) * scale,
            wo=jax.random.normal(ks[2], (input_dim, input_dim), jnp.float32) * scale,
            bo=jax.random.normal(ks[3], (1, input_dim), jnp.float32) * scale,
            w1=jax.random.normal(ks[4], (input_dim, hidden_dim), jnp.float32) * scale,
            b1=jax.random.normal(ks[5], (1, hidden_dim), jnp.float32) * scale,
            w2=jax.random.normal(ks[6], (hidden_dim, input_dim), jnp.float32) * scale,
            b2=jax.random.normal(ks[7], (1, input_dim), jnp.float32) * scale,
            g1=jnp.ones((1, input_dim), jnp.float32),
            be1=jnp.zeros((1, input_dim), jnp.float32),
            g2=jnp.ones((1, input_dim), jnp.float32),
            be2=jnp.zeros((1, input_dim), jnp.float32),
        )
        params.append(layer)
    return params


def transformer_encoder_forward(x, params, num_heads):
    """x: (S, B, D) float32 — PyTorch layout (batch_first=False). Returns same shape, f32."""
    S, B, D = x.shape
    H = num_heads
    assert D % H == 0
    Dh = D // H

    # Work internally in (B, S, D): one transpose in, one out — no per-layer
    # head transposes.
    xb = jnp.transpose(x, (1, 0, 2)).astype(_COMPUTE_DTYPE)
    x2d = xb.reshape(B * S, D)

    # TODO(synk): dropout layers are identity (eval-mode semantics); attention
    # masks / key-padding masks are not supported.
    for p in params:
        # --- self-attention block: fused QKV projection, MHA, fused out_proj+LN ---
        qkv = pallas_matmul_bias(x2d, p["wqkv"], p["bqkv"])              # (B*S, 3D)
        attn = pallas_mha(qkv.reshape(B, S, 3 * D), H, Dh)               # (B, S, D)
        x2d = pallas_proj_add_layernorm(attn.reshape(B * S, D), p["wo"], p["bo"],
                                        x2d, p["g1"], p["be1"])          # norm1(x + attn)
        # --- feed-forward block: fused FFN + residual + LayerNorm ---
        x2d = pallas_ffn_add_layernorm(x2d, p["w1"], p["b1"], p["w2"], p["b2"],
                                       p["g2"], p["be2"])                # norm2(x + ff)

    out = x2d.reshape(B, S, D)
    return jnp.transpose(out, (1, 0, 2)).astype(jnp.float32)


if __name__ == "__main__":
    # Small shapes consistent with nn.TransformerEncoderLayer(d_model, nhead, dim_feedforward)
    S, B = 8, 2            # seq_len, batch
    input_dim = 32         # d_model
    num_heads = 4
    hidden_dim = 64        # dim_feedforward
    num_layers = 2

    key = jax.random.PRNGKey(0)
    kx, kp = jax.random.split(key)
    x = jax.random.normal(kx, (S, B, input_dim), jnp.float32)
    params = init_params(kp, input_dim, num_heads, hidden_dim, num_layers)
    params = jax.tree_util.tree_map(lambda a: a.astype(_COMPUTE_DTYPE), params)

    fwd = jax.jit(transformer_encoder_forward, static_argnums=(2,))
    out = fwd(x, params, num_heads)
    out = jax.block_until_ready(out)
    assert out.shape == (S, B, input_dim)
    assert out.dtype == jnp.float32
    print("KERNEL_OK")
</pallas_src>

<mosaic_0001>
module attributes {stable_mosaic.version = 11 : i64} {
  func.func @_mha_kernel(%arg0: i32, %arg1: memref<1x8x96xbf16, #tpu.memory_space<vmem>>, %arg2: memref<1x8x32xbf16, #tpu.memory_space<vmem>>) attributes {dimension_semantics = [#tpu.dimension_semantics<parallel>], iteration_bounds = array<i64: 2>, scalar_prefetch = 0 : i64, scratch_operands = 0 : i64, tpu.core_type = #tpu.core_type<tc>, window_params = [{transform_indices = @transform_0, window_bounds = array<i64: 1, 8, 96>}, {transform_indices = @transform_1, window_bounds = array<i64: 1, 8, 32>}]} {
    %c0 = arith.constant 0 : index
    %c0_0 = arith.constant 0 : index
    %c0_1 = arith.constant 0 : index
    %0 = vector.load %arg1[%c0, %c0_0, %c0_1] : memref<1x8x96xbf16, #tpu.memory_space<vmem>>, vector<1x8x96xbf16>
    %1 = vector.shape_cast %0 : vector<1x8x96xbf16> to vector<8x96xbf16>
    %2 = vector.extract_strided_slice %1 {offsets = [0, 0], sizes = [8, 8], strides = [1, 1]} : vector<8x96xbf16> to vector<8x8xbf16>
    %3 = vector.extract_strided_slice %1 {offsets = [0, 32], sizes = [8, 8], strides = [1, 1]} : vector<8x96xbf16> to vector<8x8xbf16>
    %4 = vector.extract_strided_slice %1 {offsets = [0, 64], sizes = [8, 8], strides = [1, 1]} : vector<8x96xbf16> to vector<8x8xbf16>
    %cst = arith.constant dense<0.000000e+00> : vector<8x8xf32>
    %5 = tpu.matmul %2, %3, %cst {dimension_numbers = #tpu.dot_dimension_numbers<[1], [1], [0], [0], [0, 0, 1, 0], [], []>} : vector<8x8xbf16>, vector<8x8xbf16>, vector<8x8xf32> -> vector<8x8xf32>
    %cst_2 = arith.constant 0.353553385 : f32
    %6 = vector.broadcast %cst_2 : f32 to vector<8x8xf32>
    %7 = arith.mulf %5, %6 : vector<8x8xf32>
    %cst_3 = arith.constant dense<0xFF800000> : vector<8xf32>
    %8 = vector.multi_reduction <maximumf>, %7, %cst_3 [1] : vector<8x8xf32> to vector<8xf32>
    %9 = vector.shape_cast %8 : vector<8xf32> to vector<8x1xf32>
    %10 = vector.broadcast %9 : vector<8x1xf32> to vector<8x8xf32>
    %11 = arith.subf %7, %10 : vector<8x8xf32>
    %12 = math.exp %11 : vector<8x8xf32>
    %cst_4 = arith.constant dense<0.000000e+00> : vector<8xf32>
    %13 = vector.multi_reduction <add>, %12, %cst_4 [1] : vector<8x8xf32> to vector<8xf32>
    %14 = vector.shape_cast %13 : vector<8xf32> to vector<8x1xf32>
    %15 = tpu.reciprocal %14 {approx = true} : vector<8x1xf32> -> vector<8x1xf32>
    %16 = vector.broadcast %15 : vector<8x1xf32> to vector<8x8xf32>
    %17 = arith.mulf %12, %16 : vector<8x8xf32>
    %18 = arith.truncf %17 : vector<8x8xf32> to vector<8x8xbf16>
    %cst_5 = arith.constant dense<0.000000e+00> : vector<8x8xf32>
    %19 = tpu.matmul %18, %4, %cst_5 {dimension_numbers = #tpu.dot_dimension_numbers<[1], [0], [0], [1], [0, 0, 1, 1], [], []>} : vector<8x8xbf16>, vector<8x8xbf16>, vector<8x8xf32> -> vector<8x8xf32>
    %20 = vector.extract_strided_slice %1 {offsets = [0, 8], sizes = [8, 8], strides = [1, 1]} : vector<8x96xbf16> to vector<8x8xbf16>
    %21 = vector.extract_strided_slice %1 {offsets = [0, 40], sizes = [8, 8], strides = [1, 1]} : vector<8x96xbf16> to vector<8x8xbf16>
    %22 = vector.extract_strided_slice %1 {offsets = [0, 72], sizes = [8, 8], strides = [1, 1]} : vector<8x96xbf16> to vector<8x8xbf16>
    %cst_6 = arith.constant dense<0.000000e+00> : vector<8x8xf32>
    %23 = tpu.matmul %20, %21, %cst_6 {dimension_numbers = #tpu.dot_dimension_numbers<[1], [1], [0], [0], [0, 0, 1, 0], [], []>} : vector<8x8xbf16>, vector<8x8xbf16>, vector<8x8xf32> -> vector<8x8xf32>
    %cst_7 = arith.constant 0.353553385 : f32
    %24 = vector.broadcast %cst_7 : f32 to vector<8x8xf32>
    %25 = arith.mulf %23, %24 : vector<8x8xf32>
    %cst_8 = arith.constant dense<0xFF800000> : vector<8xf32>
    %26 = vector.multi_reduction <maximumf>, %25, %cst_8 [1] : vector<8x8xf32> to vector<8xf32>
    %27 = vector.shape_cast %26 : vector<8xf32> to vector<8x1xf32>
    %28 = vector.broadcast %27 : vector<8x1xf32> to vector<8x8xf32>
    %29 = arith.subf %25, %28 : vector<8x8xf32>
    %30 = math.exp %29 : vector<8x8xf32>
    %cst_9 = arith.constant dense<0.000000e+00> : vector<8xf32>
    %31 = vector.multi_reduction <add>, %30, %cst_9 [1] : vector<8x8xf32> to vector<8xf32>
    %32 = vector.shape_cast %31 : vector<8xf32> to vector<8x1xf32>
    %33 = tpu.reciprocal %32 {approx = true} : vector<8x1xf32> -> vector<8x1xf32>
    %34 = vector.broadcast %33 : vector<8x1xf32> to vector<8x8xf32>
    %35 = arith.mulf %30, %34 : vector<8x8xf32>
    %36 = arith.truncf %35 : vector<8x8xf32> to vector<8x8xbf16>
    %cst_10 = arith.constant dense<0.000000e+00> : vector<8x8xf32>
    %37 = tpu.matmul %36, %22, %cst_10 {dimension_numbers = #tpu.dot_dimension_numbers<[1], [0], [0], [1], [0, 0, 1, 1], [], []>} : vector<8x8xbf16>, vector<8x8xbf16>, vector<8x8xf32> -> vector<8x8xf32>
    %38 = vector.extract_strided_slice %1 {offsets = [0, 16], sizes = [8, 8], strides = [1, 1]} : vector<8x96xbf16> to vector<8x8xbf16>
    %39 = vector.extract_strided_slice %1 {offsets = [0, 48], sizes = [8, 8], strides = [1, 1]} : vector<8x96xbf16> to vector<8x8xbf16>
    %40 = vector.extract_strided_slice %1 {offsets = [0, 80], sizes = [8, 8], strides = [1, 1]} : vector<8x96xbf16> to vector<8x8xbf16>
    %cst_11 = arith.constant dense<0.000000e+00> : vector<8x8xf32>
    %41 = tpu.matmul %38, %39, %cst_11 {dimension_numbers = #tpu.dot_dimension_numbers<[1], [1], [0], [0], [0, 0, 1, 0], [], []>} : vector<8x8xbf16>, vector<8x8xbf16>, vector<8x8xf32> -> vector<8x8xf32>
    %cst_12 = arith.constant 0.353553385 : f32
    %42 = vector.broadcast %cst_12 : f32 to vector<8x8xf32>
    %43 = arith.mulf %41, %42 : vector<8x8xf32>
    %cst_13 = arith.constant dense<0xFF800000> : vector<8xf32>
    %44 = vector.multi_reduction <maximumf>, %43, %cst_13 [1] : vector<8x8xf32> to vector<8xf32>
    %45 = vector.shape_cast %44 : vector<8xf32> to vector<8x1xf32>
    %46 = vector.broadcast %45 : vector<8x1xf32> to vector<8x8xf32>
    %47 = arith.subf %43, %46 : vector<8x8xf32>
    %48 = math.exp %47 : vector<8x8xf32>
    %cst_14 = arith.constant dense<0.000000e+00> : vector<8xf32>
    %49 = vector.multi_reduction <add>, %48, %cst_14 [1] : vector<8x8xf32> to vector<8xf32>
    %50 = vector.shape_cast %49 : vector<8xf32> to vector<8x1xf32>
    %51 = tpu.reciprocal %50 {approx = true} : vector<8x1xf32> -> vector<8x1xf32>
    %52 = vector.broadcast %51 : vector<8x1xf32> to vector<8x8xf32>
    %53 = arith.mulf %48, %52 : vector<8x8xf32>
    %54 = arith.truncf %53 : vector<8x8xf32> to vector<8x8xbf16>
    %cst_15 = arith.constant dense<0.000000e+00> : vector<8x8xf32>
    %55 = tpu.matmul %54, %40, %cst_15 {dimension_numbers = #tpu.dot_dimension_numbers<[1], [0], [0], [1], [0, 0, 1, 1], [], []>} : vector<8x8xbf16>, vector<8x8xbf16>, vector<8x8xf32> -> vector<8x8xf32>
    %56 = vector.extract_strided_slice %1 {offsets = [0, 24], sizes = [8, 8], strides = [1, 1]} : vector<8x96xbf16> to vector<8x8xbf16>
    %57 = vector.extract_strided_slice %1 {offsets = [0, 56], sizes = [8, 8], strides = [1, 1]} : vector<8x96xbf16> to vector<8x8xbf16>
    %58 = vector.extract_strided_slice %1 {offsets = [0, 88], sizes = [8, 8], strides = [1, 1]} : vector<8x96xbf16> to vector<8x8xbf16>
    %cst_16 = arith.constant dense<0.000000e+00> : vector<8x8xf32>
    %59 = tpu.matmul %56, %57, %cst_16 {dimension_numbers = #tpu.dot_dimension_numbers<[1], [1], [0], [0], [0, 0, 1, 0], [], []>} : vector<8x8xbf16>, vector<8x8xbf16>, vector<8x8xf32> -> vector<8x8xf32>
    %cst_17 = arith.constant 0.353553385 : f32
    %60 = vector.broadcast %cst_17 : f32 to vector<8x8xf32>
    %61 = arith.mulf %59, %60 : vector<8x8xf32>
    %cst_18 = arith.constant dense<0xFF800000> : vector<8xf32>
    %62 = vector.multi_reduction <maximumf>, %61, %cst_18 [1] : vector<8x8xf32> to vector<8xf32>
    %63 = vector.shape_cast %62 : vector<8xf32> to vector<8x1xf32>
    %64 = vector.broadcast %63 : vector<8x1xf32> to vector<8x8xf32>
    %65 = arith.subf %61, %64 : vector<8x8xf32>
    %66 = math.exp %65 : vector<8x8xf32>
    %cst_19 = arith.constant dense<0.000000e+00> : vector<8xf32>
    %67 = vector.multi_reduction <add>, %66, %cst_19 [1] : vector<8x8xf32> to vector<8xf32>
    %68 = vector.shape_cast %67 : vector<8xf32> to vector<8x1xf32>
    %69 = tpu.reciprocal %68 {approx = true} : vector<8x1xf32> -> vector<8x1xf32>
    %70 = vector.broadcast %69 : vector<8x1xf32> to vector<8x8xf32>
    %71 = arith.mulf %66, %70 : vector<8x8xf32>
    %72 = arith.truncf %71 : vector<8x8xf32> to vector<8x8xbf16>
    %cst_20 = arith.constant dense<0.000000e+00> : vector<8x8xf32>
    %73 = tpu.matmul %72, %58, %cst_20 {dimension_numbers = #tpu.dot_dimension_numbers<[1], [0], [0], [1], [0, 0, 1, 1], [], []>} : vector<8x8xbf16>, vector<8x8xbf16>, vector<8x8xf32> -> vector<8x8xf32>
    %74 = tpu.concatenate %19, %37, %55, %73 in 1 : vector<8x8xf32>, vector<8x8xf32>, vector<8x8xf32>, vector<8x8xf32> -> vector<8x32xf32>
    %75 = arith.truncf %74 : vector<8x32xf32> to vector<8x32xbf16>
    %c0_21 = arith.constant 0 : index
    %c0_22 = arith.constant 0 : index
    %c0_23 = arith.constant 0 : index
    %76 = vector.load %arg2[%c0_21, %c0_22, %c0_23] : memref<1x8x32xbf16, #tpu.memory_space<vmem>>, vector<1x8x32xbf16>
    %77 = vector.shape_cast %76 : vector<1x8x32xbf16> to vector<8x32xbf16>
    %78 = vector.shape_cast %75 : vector<8x32xbf16> to vector<1x8x32xbf16>
    tpu.vector_store %arg2[%c0_21, %c0_22, %c0_23], %78 {strides = array<i32>} : memref<1x8x32xbf16, #tpu.memory_space<vmem>>, vector<1x8x32xbf16>,
    return
  }
  func.func @transform_0(%arg0: i32) -> (i32, i32, i32) {
    %c0_i32 = arith.constant 0 : i32
    %c0_i32_0 = arith.constant 0 : i32
    %c0_i32_1 = arith.constant 0 : i32
    return %arg0, %c0_i32, %c0_i32_0 : i32, i32, i32
  }
  func.func @transform_1(%arg0: i32) -> (i32, i32, i32) {
    %c0_i32 = arith.constant 0 : i32
    %c0_i32_0 = arith.constant 0 : i32
    %c0_i32_1 = arith.constant 0 : i32
    return %arg0, %c0_i32, %c0_i32_0 : i32, i32, i32
  }
}

module attributes {stable_mosaic.version = 11 : i64} {
  func.func @_matmul_bias_kernel(%arg0: i32, %arg1: i32, %arg2: i32, %arg3: memref<16x32xbf16, #tpu.memory_space<vmem>>, %arg4: memref<32x96xbf16, #tpu.memory_space<vmem>>, %arg5: memref<1x96xbf16, #tpu.memory_space<vmem>>, %arg6: memref<16x96xbf16, #tpu.memory_space<vmem>>, %arg7: memref<16x96xf32, #tpu.memory_space<vmem>>) attributes {dimension_semantics = [#tpu.dimension_semantics<parallel>, #tpu.dimension_semantics<parallel>, #tpu.dimension_semantics<arbitrary>], iteration_bounds = array<i64: 1, 1, 1>, scalar_prefetch = 0 : i64, scratch_operands = 1 : i64, tpu.core_type = #tpu.core_type<tc>, window_params = [{transform_indices = @transform_0, window_bounds = array<i64: 16, 32>}, {transform_indices = @transform_1, window_bounds = array<i64: 32, 96>}, {transform_indices = @transform_2, window_bounds = array<i64: 1, 96>}, {transform_indices = @transform_3, window_bounds = array<i64: 16, 96>}]} {
    %c0_i32 = arith.constant 0 : i32
    %0 = arith.cmpi eq, %arg2, %c0_i32 : i32
    %1 = arith.extui %0 : i1 to i32
    %c0_i32_0 = arith.constant 0 : i32
    %2 = arith.cmpi ne, %1, %c0_i32_0 : i32
    scf.if %2 {
      %cst_10 = arith.constant 0.000000e+00 : f32
      %12 = vector.broadcast %cst_10 : f32 to vector<16x96xf32>
      %c0_11 = arith.constant 0 : index
      %c0_12 = arith.constant 0 : index
      %13 = vector.load %arg7[%c0_11, %c0_12] : memref<16x96xf32, #tpu.memory_space<vmem>>, vector<16x96xf32>
      tpu.vector_store %arg7[%c0_11, %c0_12], %12 {strides = array<i32>} : memref<16x96xf32, #tpu.memory_space<vmem>>, vector<16x96xf32>,
    } else {
    }
    %c0 = arith.constant 0 : index
    %c0_1 = arith.constant 0 : index
    %3 = vector.load %arg7[%c0, %c0_1] : memref<16x96xf32, #tpu.memory_space<vmem>>, vector<16x96xf32>
    %c0_2 = arith.constant 0 : index
    %c0_3 = arith.constant 0 : index
    %4 = vector.load %arg3[%c0_2, %c0_3] : memref<16x32xbf16, #tpu.memory_space<vmem>>, vector<16x32xbf16>
    %c0_4 = arith.constant 0 : index
    %c0_5 = arith.constant 0 : index
    %5 = vector.load %arg4[%c0_4, %c0_5] : memref<32x96xbf16, #tpu.memory_space<vmem>>, vector<32x96xbf16>
    %cst = arith.constant dense<0.000000e+00> : vector<16x96xf32>
    %6 = tpu.matmul %4, %5, %cst {dimension_numbers = #tpu.dot_dimension_numbers<[1], [0], [0], [1], [0, 0, 1, 1], [], []>} : vector<16x32xbf16>, vector<32x96xbf16>, vector<16x96xf32> -> vector<16x96xf32>
    %7 = arith.addf %3, %6 : vector<16x96xf32>
    %c0_6 = arith.constant 0 : index
    %c0_7 = arith.constant 0 : index
    %8 = vector.load %arg7[%c0_6, %c0_7] : memref<16x96xf32, #tpu.memory_space<vmem>>, vector<16x96xf32>
    tpu.vector_store %arg7[%c0_6, %c0_7], %7 {strides = array<i32>} : memref<16x96xf32, #tpu.memory_space<vmem>>, vector<16x96xf32>,
    %c0_i32_8 = arith.constant 0 : i32
    %9 = arith.cmpi eq, %arg2, %c0_i32_8 : i32
    %10 = arith.extui %9 : i1 to i32
    %c0_i32_9 = arith.constant 0 : i32
    %11 = arith.cmpi ne, %10, %c0_i32_9 : i32
    scf.if %11 {
      %c0_10 = arith.constant 0 : index
      %c0_11 = arith.constant 0 : index
      %12 = vector.load %arg7[%c0_10, %c0_11] : memref<16x96xf32, #tpu.memory_space<vmem>>, vector<16x96xf32>
      %c0_12 = arith.constant 0 : index
      %c0_13 = arith.constant 0 : index
      %13 = vector.load %arg5[%c0_12, %c0_13] : memref<1x96xbf16, #tpu.memory_space<vmem>>, vector<1x96xbf16>
      %14 = arith.extf %13 : vector<1x96xbf16> to vector<1x96xf32>
      %15 = vector.broadcast %14 : vector<1x96xf32> to vector<16x96xf32>
      %16 = arith.addf %12, %15 : vector<16x96xf32>
      %17 = arith.truncf %16 : vector<16x96xf32> to vector<16x96xbf16>
      %c0_14 = arith.constant 0 : index
      %c0_15 = arith.constant 0 : index
      %18 = vector.load %arg6[%c0_14, %c0_15] : memref<16x96xbf16, #tpu.memory_space<vmem>>, vector<16x96xbf16>
      tpu.vector_store %arg6[%c0_14, %c0_15], %17 {strides = array<i32>} : memref<16x96xbf16, #tpu.memory_space<vmem>>, vector<16x96xbf16>,
    } else {
    }
    return
  }
  func.func @transform_0(%arg0: i32, %arg1: i32, %arg2: i32) -> (i32, i32) {
    %c0_i32 = arith.constant 0 : i32
    return %arg0, %arg2 : i32, i32
  }
  func.func @transform_1(%arg0: i32, %arg1: i32, %arg2: i32) -> (i32, i32) {
    %c0_i32 = arith.constant 0 : i32
    return %arg2, %arg1 : i32, i32
  }
  func.func @transform_2(%arg0: i32, %arg1: i32, %arg2: i32) -> (i32, i32) {
    %c0_i32 = arith.constant 0 : i32
    %c0_i32_0 = arith.constant 0 : i32
    return %c0_i32, %arg1 : i32, i32
  }
  func.func @transform_3(%arg0: i32, %arg1: i32, %arg2: i32) -> (i32, i32) {
    %c0_i32 = arith.constant 0 : i32
    return %arg0, %arg1 : i32, i32
  }
}

module attributes {stable_mosaic.version = 11 : i64} {
  func.func @_proj_add_ln_kernel(%arg0: i32, %arg1: memref<16x32xbf16, #tpu.memory_space<vmem>>, %arg2: memref<32x32xbf16, #tpu.memory_space<vmem>>, %arg3: memref<1x32xbf16, #tpu.memory_space<vmem>>, %arg4: memref<16x32xbf16, #tpu.memory_space<vmem>>, %arg5: memref<1x32xbf16, #tpu.memory_space<vmem>>, %arg6: memref<1x32xbf16, #tpu.memory_space<vmem>>, %arg7: memref<16x32xbf16, #tpu.memory_space<vmem>>) attributes {dimension_semantics = [#tpu.dimension_semantics<parallel>], iteration_bounds = array<i64: 1>, scalar_prefetch = 0 : i64, scratch_operands = 0 : i64, tpu.core_type = #tpu.core_type<tc>, window_params = [{transform_indices = @transform_0, window_bounds = array<i64: 16, 32>}, {pipeline_mode = #tpu.pipeline_mode<synchronous>, transform_indices = @transform_1, window_bounds = array<i64: 32, 32>}, {pipeline_mode = #tpu.pipeline_mode<synchronous>, transform_indices = @transform_2, window_bounds = array<i64: 1, 32>}, {transform_indices = @transform_3, window_bounds = array<i64: 16, 32>}, {pipeline_mode = #tpu.pipeline_mode<synchronous>, transform_indices = @transform_4, window_bounds = array<i64: 1, 32>}, {pipeline_mode = #tpu.pipeline_mode<synchronous>, transform_indices = @transform_5, window_bounds = array<i64: 1, 32>}, {transform_indices = @transform_6, window_bounds = array<i64: 16, 32>}]} {
    %c0 = arith.constant 0 : index
    %c0_0 = arith.constant 0 : index
    %0 = vector.load %arg1[%c0, %c0_0] : memref<16x32xbf16, #tpu.memory_space<vmem>>, vector<16x32xbf16>
    %c0_1 = arith.constant 0 : index
    %c0_2 = arith.constant 0 : index
    %1 = vector.load %arg2[%c0_1, %c0_2] : memref<32x32xbf16, #tpu.memory_space<vmem>>, vector<32x32xbf16>
    %cst = arith.constant dense<0.000000e+00> : vector<16x32xf32>
    %2 = tpu.matmul %0, %1, %cst {dimension_numbers = #tpu.dot_dimension_numbers<[1], [0], [0], [1], [0, 0, 1, 1], [], []>} : vector<16x32xbf16>, vector<32x32xbf16>, vector<16x32xf32> -> vector<16x32xf32>
    %c0_3 = arith.constant 0 : index
    %c0_4 = arith.constant 0 : index
    %3 = vector.load %arg3[%c0_3, %c0_4] : memref<1x32xbf16, #tpu.memory_space<vmem>>, vector<1x32xbf16>
    %4 = arith.extf %3 : vector<1x32xbf16> to vector<1x32xf32>
    %5 = vector.broadcast %4 : vector<1x32xf32> to vector<16x32xf32>
    %6 = arith.addf %2, %5 : vector<16x32xf32>
    %c0_5 = arith.constant 0 : index
    %c0_6 = arith.constant 0 : index
    %7 = vector.load %arg4[%c0_5, %c0_6] : memref<16x32xbf16, #tpu.memory_space<vmem>>, vector<16x32xbf16>
    %8 = arith.extf %7 : vector<16x32xbf16> to vector<16x32xf32>
    %9 = arith.addf %6, %8 : vector<16x32xf32>
    %cst_7 = arith.constant dense<0.000000e+00> : vector<16xf32>
    %10 = vector.multi_reduction <add>, %9, %cst_7 [1] : vector<16x32xf32> to vector<16xf32>
    %11 = vector.shape_cast %10 : vector<16xf32> to vector<16x1xf32>
    %cst_8 = arith.constant 3.200000e+01 : f32
    %12 = vector.broadcast %cst_8 : f32 to vector<16x1xf32>
    %13 = arith.divf %11, %12 : vector<16x1xf32>
    %14 = vector.broadcast %13 : vector<16x1xf32> to vector<16x32xf32>
    %15 = arith.subf %9, %14 : vector<16x32xf32>
    %16 = arith.mulf %15, %15 : vector<16x32xf32>
    %cst_9 = arith.constant dense<0.000000e+00> : vector<16xf32>
    %17 = vector.multi_reduction <add>, %16, %cst_9 [1] : vector<16x32xf32> to vector<16xf32>
    %18 = vector.shape_cast %17 : vector<16xf32> to vector<16x1xf32>
    %cst_10 = arith.constant 3.200000e+01 : f32
    %19 = vector.broadcast %cst_10 : f32 to vector<16x1xf32>
    %20 = arith.divf %18, %19 : vector<16x1xf32>
    %21 = vector.broadcast %13 : vector<16x1xf32> to vector<16x32xf32>
    %22 = arith.subf %9, %21 : vector<16x32xf32>
    %cst_11 = arith.constant 9.99999974E-6 : f32
    %23 = vector.broadcast %cst_11 : f32 to vector<16x1xf32>
    %24 = arith.addf %20, %23 : vector<16x1xf32>
    %25 = math.rsqrt %24 : vector<16x1xf32>
    %26 = vector.broadcast %25 : vector<16x1xf32> to vector<16x32xf32>
    %27 = arith.mulf %22, %26 : vector<16x32xf32>
    %c0_12 = arith.constant 0 : index
    %c0_13 = arith.constant 0 : index
    %28 = vector.load %arg5[%c0_12, %c0_13] : memref<1x32xbf16, #tpu.memory_space<vmem>>, vector<1x32xbf16>
    %29 = arith.extf %28 : vector<1x32xbf16> to vector<1x32xf32>
    %30 = vector.broadcast %29 : vector<1x32xf32> to vector<16x32xf32>
    %31 = arith.mulf %27, %30 : vector<16x32xf32>
    %c0_14 = arith.constant 0 : index
    %c0_15 = arith.constant 0 : index
    %32 = vector.load %arg6[%c0_14, %c0_15] : memref<1x32xbf16, #tpu.memory_space<vmem>>, vector<1x32xbf16>
    %33 = arith.extf %32 : vector<1x32xbf16> to vector<1x32xf32>
    %34 = vector.broadcast %33 : vector<1x32xf32> to vector<16x32xf32>
    %35 = arith.addf %31, %34 : vector<16x32xf32>
    %36 = arith.truncf %35 : vector<16x32xf32> to vector<16x32xbf16>
    %c0_16 = arith.constant 0 : index
    %c0_17 = arith.constant 0 : index
    %37 = vector.load %arg7[%c0_16, %c0_17] : memref<16x32xbf16, #tpu.memory_space<vmem>>, vector<16x32xbf16>
    tpu.vector_store %arg7[%c0_16, %c0_17], %36 {strides = array<i32>} : memref<16x32xbf16, #tpu.memory_space<vmem>>, vector<16x32xbf16>,
    return
  }
  func.func @transform_0(%arg0: i32) -> (i32, i32) {
    %c0_i32 = arith.constant 0 : i32
    %c0_i32_0 = arith.constant 0 : i32
    return %arg0, %c0_i32 : i32, i32
  }
  func.func @transform_1(%arg0: i32) -> (i32, i32) {
    %c0_i32 = arith.constant 0 : i32
    %c0_i32_0 = arith.constant 0 : i32
    %c0_i32_1 = arith.constant 0 : i32
    return %c0_i32, %c0_i32_0 : i32, i32
  }
  func.func @transform_2(%arg0: i32) -> (i32, i32) {
    %c0_i32 = arith.constant 0 : i32
    %c0_i32_0 = arith.constant 0 : i32
    %c0_i32_1 = arith.constant 0 : i32
    return %c0_i32, %c0_i32_0 : i32, i32
  }
  func.func @transform_3(%arg0: i32) -> (i32, i32) {
    %c0_i32 = arith.constant 0 : i32
    %c0_i32_0 = arith.constant 0 : i32
    return %arg0, %c0_i32 : i32, i32
  }
  func.func @transform_4(%arg0: i32) -> (i32, i32) {
    %c0_i32 = arith.constant 0 : i32
    %c0_i32_0 = arith.constant 0 : i32
    %c0_i32_1 = arith.constant 0 : i32
    return %c0_i32, %c0_i32_0 : i32, i32
  }
  func.func @transform_5(%arg0: i32) -> (i32, i32) {
    %c0_i32 = arith.constant 0 : i32
    %c0_i32_0 = arith.constant 0 : i32
    %c0_i32_1 = arith.constant 0 : i32
    return %c0_i32, %c0_i32_0 : i32, i32
  }
  func.func @transform_6(%arg0: i32) -> (i32, i32) {
    %c0_i32 = arith.constant 0 : i32
    %c0_i32_0 = arith.constant 0 : i32
    return %arg0, %c0_i32 : i32, i32
  }
}

module attributes {stable_mosaic.version = 11 : i64} {
  func.func @_ffn_add_ln_kernel(%arg0: i32, %arg1: i32, %arg2: memref<16x32xbf16, #tpu.memory_space<vmem>>, %arg3: memref<32x64xbf16, #tpu.memory_space<vmem>>, %arg4: memref<1x64xbf16, #tpu.memory_space<vmem>>, %arg5: memref<64x32xbf16, #tpu.memory_space<vmem>>, %arg6: memref<1x32xbf16, #tpu.memory_space<vmem>>, %arg7: memref<1x32xbf16, #tpu.memory_space<vmem>>, %arg8: memref<1x32xbf16, #tpu.memory_space<vmem>>, %arg9: memref<16x32xbf16, #tpu.memory_space<vmem>>, %arg10: memref<16x32xf32, #tpu.memory_space<vmem>>) attributes {dimension_semantics = [#tpu.dimension_semantics<parallel>, #tpu.dimension_semantics<arbitrary>], iteration_bounds = array<i64: 1, 1>, scalar_prefetch = 0 : i64, scratch_operands = 1 : i64, tpu.core_type = #tpu.core_type<tc>, window_params = [{transform_indices = @transform_0, window_bounds = array<i64: 16, 32>}, {transform_indices = @transform_1, window_bounds = array<i64: 32, 64>}, {transform_indices = @transform_2, window_bounds = array<i64: 1, 64>}, {transform_indices = @transform_3, window_bounds = array<i64: 64, 32>}, {pipeline_mode = #tpu.pipeline_mode<synchronous>, transform_indices = @transform_4, window_bounds = array<i64: 1, 32>}, {pipeline_mode = #tpu.pipeline_mode<synchronous>, transform_indices = @transform_5, window_bounds = array<i64: 1, 32>}, {pipeline_mode = #tpu.pipeline_mode<synchronous>, transform_indices = @transform_6, window_bounds = array<i64: 1, 32>}, {transform_indices = @transform_7, window_bounds = array<i64: 16, 32>}]} {
    %c0_i32 = arith.constant 0 : i32
    %0 = arith.cmpi eq, %arg1, %c0_i32 : i32
    %1 = arith.extui %0 : i1 to i32
    %c0_i32_0 = arith.constant 0 : i32
    %2 = arith.cmpi ne, %1, %c0_i32_0 : i32
    scf.if %2 {
      %cst_16 = arith.constant 0.000000e+00 : f32
      %21 = vector.broadcast %cst_16 : f32 to vector<16x32xf32>
      %c0_17 = arith.constant 0 : index
      %c0_18 = arith.constant 0 : index
      %22 = vector.load %arg10[%c0_17, %c0_18] : memref<16x32xf32, #tpu.memory_space<vmem>>, vector<16x32xf32>
      tpu.vector_store %arg10[%c0_17, %c0_18], %21 {strides = array<i32>} : memref<16x32xf32, #tpu.memory_space<vmem>>, vector<16x32xf32>,
    } else {
    }
    %c0 = arith.constant 0 : index
    %c0_1 = arith.constant 0 : index
    %3 = vector.load %arg2[%c0, %c0_1] : memref<16x32xbf16, #tpu.memory_space<vmem>>, vector<16x32xbf16>
    %c0_2 = arith.constant 0 : index
    %c0_3 = arith.constant 0 : index
    %4 = vector.load %arg3[%c0_2, %c0_3] : memref<32x64xbf16, #tpu.memory_space<vmem>>, vector<32x64xbf16>
    %cst = arith.constant dense<0.000000e+00> : vector<16x64xf32>
    %5 = tpu.matmul %3, %4, %cst {dimension_numbers = #tpu.dot_dimension_numbers<[1], [0], [0], [1], [0, 0, 1, 1], [], []>} : vector<16x32xbf16>, vector<32x64xbf16>, vector<16x64xf32> -> vector<16x64xf32>
    %c0_4 = arith.constant 0 : index
    %c0_5 = arith.constant 0 : index
    %6 = vector.load %arg4[%c0_4, %c0_5] : memref<1x64xbf16, #tpu.memory_space<vmem>>, vector<1x64xbf16>
    %7 = arith.extf %6 : vector<1x64xbf16> to vector<1x64xf32>
    %8 = vector.broadcast %7 : vector<1x64xf32> to vector<16x64xf32>
    %9 = arith.addf %5, %8 : vector<16x64xf32>
    %cst_6 = arith.constant 0.000000e+00 : f32
    %10 = vector.broadcast %cst_6 : f32 to vector<16x64xf32>
    %11 = arith.maximumf %9, %10 : vector<16x64xf32>
    %c0_7 = arith.constant 0 : index
    %c0_8 = arith.constant 0 : index
    %12 = vector.load %arg10[%c0_7, %c0_8] : memref<16x32xf32, #tpu.memory_space<vmem>>, vector<16x32xf32>
    %13 = arith.truncf %11 : vector<16x64xf32> to vector<16x64xbf16>
    %c0_9 = arith.constant 0 : index
    %c0_10 = arith.constant 0 : index
    %14 = vector.load %arg5[%c0_9, %c0_10] : memref<64x32xbf16, #tpu.memory_space<vmem>>, vector<64x32xbf16>
    %cst_11 = arith.constant dense<0.000000e+00> : vector<16x32xf32>
    %15 = tpu.matmul %13, %14, %cst_11 {dimension_numbers = #tpu.dot_dimension_numbers<[1], [0], [0], [1], [0, 0, 1, 1], [], []>} : vector<16x64xbf16>, vector<64x32xbf16>, vector<16x32xf32> -> vector<16x32xf32>
    %16 = arith.addf %12, %15 : vector<16x32xf32>
    %c0_12 = arith.constant 0 : index
    %c0_13 = arith.constant 0 : index
    %17 = vector.load %arg10[%c0_12, %c0_13] : memref<16x32xf32, #tpu.memory_space<vmem>>, vector<16x32xf32>
    tpu.vector_store %arg10[%c0_12, %c0_13], %16 {strides = array<i32>} : memref<16x32xf32, #tpu.memory_space<vmem>>, vector<16x32xf32>,
    %c0_i32_14 = arith.constant 0 : i32
    %18 = arith.cmpi eq, %arg1, %c0_i32_14 : i32
    %19 = arith.extui %18 : i1 to i32
    %c0_i32_15 = arith.constant 0 : i32
    %20 = arith.cmpi ne, %19, %c0_i32_15 : i32
    scf.if %20 {
      %c0_16 = arith.constant 0 : index
      %c0_17 = arith.constant 0 : index
      %21 = vector.load %arg10[%c0_16, %c0_17] : memref<16x32xf32, #tpu.memory_space<vmem>>, vector<16x32xf32>
      %c0_18 = arith.constant 0 : index
      %c0_19 = arith.constant 0 : index
      %22 = vector.load %arg6[%c0_18, %c0_19] : memref<1x32xbf16, #tpu.memory_space<vmem>>, vector<1x32xbf16>
      %23 = arith.extf %22 : vector<1x32xbf16> to vector<1x32xf32>
      %24 = vector.broadcast %23 : vector<1x32xf32> to vector<16x32xf32>
      %25 = arith.addf %21, %24 : vector<16x32xf32>
      %c0_20 = arith.constant 0 : index
      %c0_21 = arith.constant 0 : index
      %26 = vector.load %arg2[%c0_20, %c0_21] : memref<16x32xbf16, #tpu.memory_space<vmem>>, vector<16x32xbf16>
      %27 = arith.extf %26 : vector<16x32xbf16> to vector<16x32xf32>
      %28 = arith.addf %25, %27 : vector<16x32xf32>
      %cst_22 = arith.constant dense<0.000000e+00> : vector<16xf32>
      %29 = vector.multi_reduction <add>, %28, %cst_22 [1] : vector<16x32xf32> to vector<16xf32>
      %30 = vector.shape_cast %29 : vector<16xf32> to vector<16x1xf32>
      %cst_23 = arith.constant 3.200000e+01 : f32
      %31 = vector.broadcast %cst_23 : f32 to vector<16x1xf32>
      %32 = arith.divf %30, %31 : vector<16x1xf32>
      %33 = vector.broadcast %32 : vector<16x1xf32> to vector<16x32xf32>
      %34 = arith.subf %28, %33 : vector<16x32xf32>
      %35 = arith.mulf %34, %34 : vector<16x32xf32>
      %cst_24 = arith.constant dense<0.000000e+00> : vector<16xf32>
      %36 = vector.multi_reduction <add>, %35, %cst_24 [1] : vector<16x32xf32> to vector<16xf32>
      %37 = vector.shape_cast %36 : vector<16xf32> to vector<16x1xf32>
      %cst_25 = arith.constant 3.200000e+01 : f32
      %38 = vector.broadcast %cst_25 : f32 to vector<16x1xf32>
      %39 = arith.divf %37, %38 : vector<16x1xf32>
      %40 = vector.broadcast %32 : vector<16x1xf32> to vector<16x32xf32>
      %41 = arith.subf %28, %40 : vector<16x32xf32>
      %cst_26 = arith.constant 9.99999974E-6 : f32
      %42 = vector.broadcast %cst_26 : f32 to vector<16x1xf32>
      %43 = arith.addf %39, %42 : vector<16x1xf32>
      %44 = math.rsqrt %43 : vector<16x1xf32>
      %45 = vector.broadcast %44 : vector<16x1xf32> to vector<16x32xf32>
      %46 = arith.mulf %41, %45 : vector<16x32xf32>
      %c0_27 = arith.constant 0 : index
      %c0_28 = arith.constant 0 : index
      %47 = vector.load %arg7[%c0_27, %c0_28] : memref<1x32xbf16, #tpu.memory_space<vmem>>, vector<1x32xbf16>
      %48 = arith.extf %47 : vector<1x32xbf16> to vector<1x32xf32>
      %49 = vector.broadcast %48 : vector<1x32xf32> to vector<16x32xf32>
      %50 = arith.mulf %46, %49 : vector<16x32xf32>
      %c0_29 = arith.constant 0 : index
      %c0_30 = arith.constant 0 : index
      %51 = vector.load %arg8[%c0_29, %c0_30] : memref<1x32xbf16, #tpu.memory_space<vmem>>, vector<1x32xbf16>
      %52 = arith.extf %51 : vector<1x32xbf16> to vector<1x32xf32>
      %53 = vector.broadcast %52 : vector<1x32xf32> to vector<16x32xf32>
      %54 = arith.addf %50, %53 : vector<16x32xf32>
      %55 = arith.truncf %54 : vector<16x32xf32> to vector<16x32xbf16>
      %c0_31 = arith.constant 0 : index
      %c0_32 = arith.constant 0 : index
      %56 = vector.load %arg9[%c0_31, %c0_32] : memref<16x32xbf16, #tpu.memory_space<vmem>>, vector<16x32xbf16>
      tpu.vector_store %arg9[%c0_31, %c0_32], %55 {strides = array<i32>} : memref<16x32xbf16, #tpu.memory_space<vmem>>, vector<16x32xbf16>,
    } else {
    }
    return
  }
  func.func @transform_0(%arg0: i32, %arg1: i32) -> (i32, i32) {
    %c0_i32 = arith.constant 0 : i32
    %c0_i32_0 = arith.constant 0 : i32
    return %arg0, %c0_i32 : i32, i32
  }
  func.func @transform_1(%arg0: i32, %arg1: i32) -> (i32, i32) {
    %c0_i32 = arith.constant 0 : i32
    %c0_i32_0 = arith.constant 0 : i32
    return %c0_i32, %arg1 : i32, i32
  }
  func.func @transform_2(%arg0: i32, %arg1: i32) -> (i32, i32) {
    %c0_i32 = arith.constant 0 : i32
    %c0_i32_0 = arith.constant 0 : i32
    return %c0_i32, %arg1 : i32, i32
  }
  func.func @transform_3(%arg0: i32, %arg1: i32) -> (i32, i32) {
    %c0_i32 = arith.constant 0 : i32
    %c0_i32_0 = arith.constant 0 : i32
    return %arg1, %c0_i32 : i32, i32
  }
  func.func @transform_4(%arg0: i32, %arg1: i32) -> (i32, i32) {
    %c0_i32 = arith.constant 0 : i32
    %c0_i32_0 = arith.constant 0 : i32
    %c0_i32_1 = arith.constant 0 : i32
    return %c0_i32, %c0_i32_0 : i32, i32
  }
  func.func @transform_5(%arg0: i32, %arg1: i32) -> (i32, i32) {
    %c0_i32 = arith.constant 0 : i32
    %c0_i32_0 = arith.constant 0 : i32
    %c0_i32_1 = arith.constant 0 : i32
    return %c0_i32, %c0_i32_0 : i32, i32
  }
  func.func @transform_6(%arg0: i32, %arg1: i32) -> (i32, i32) {
    %c0_i32 = arith.constant 0 : i32
    %c0_i32_0 = arith.constant 0 : i32
    %c0_i32_1 = arith.constant 0 : i32
    return %c0_i32, %c0_i32_0 : i32, i32
  }
  func.func @transform_7(%arg0: i32, %arg1: i32) -> (i32, i32) {
    %c0_i32 = arith.constant 0 : i32
    %c0_i32_0 = arith.constant 0 : i32
    return %arg0, %c0_i32 : i32, i32
  }
}

</mosaic_0001>

<bundles_post_ra>
// kernel: transformer_encoder_forward.9
= control target key start
LH: loop header
LB: loop body
LE: loop exit
PB: predicated region body
PF: predicated region fallthrough
CT: control target
= control target key end

     0   :  { %s791_s6 = smov 0   ;;  %s880_s0 = inlined_call_operand.vmem [shape: bf16[2,8,96], index: 0, kind: input, shape index: {}]   ;;  %s881_s1 = inlined_call_operand.vmem [shape: bf16[2,8,32], index: 1, kind: output, shape index: {}]  }
   0x1 LB: > { %s634_s7 = sadd.s32 4294967295, %s763_s6   ;;  %p638_p0 = scmp.ge.s32.totalorder %s763_s6, 1  ;;  %s763_s6 = sphi %s791_s6, %s11_s6  }
   0x2   : > { %p86_p1 = scmp.lt.s32.totalorder %s763_s6, 3 }
   0x4   : > { %p87_p2 = pnand %p638_p0, %p86_p1 }
   0x5   : > { %p104_p3 = scmp.lt.s32.totalorder (!%p87_p2), %s634_s7, 1  ;;  %s767_s12 = smov (!%p87_p2), 96  }
   0x6   : > { %90 = sbr.rel (%p87_p2) target bundleno = 1539 (0x603), region = 24  ;;  %s768_s13 = smov (!%p87_p2), 64  }
   0x7   : > { %s769_s14 = smov (!%p87_p2), 88   ;;  %s770_s15 = smov (!%p87_p2), 72  }
   0x8   : > { %s771_s16 = smov (!%p87_p2), 120   ;;  %s772_s17 = smov (!%p87_p2), 80  }
   0x9   : > { %s773_s18 = smov (!%p87_p2), 112   ;;  %s774_s19 = smov (!%p87_p2), 104  }
   0xa   : > { %s775_s20 = smov (!%p87_p2), 56   ;;  %s776_s21 = smov (!%p87_p2), 48  }
   0xb   : > { %v765_v0 = vmov 0.0   ;;  %vm766_vm0 = vmmov 0   ;;  %s883_s7 = smov (!%p104_p3, %s634_s7), 1  ;;  %vm119_vm1 = vcmask 64512   ;;  %vm184_vm2 = vcmask 1043456   ;;  %s777_s22 = smov 40  }
   0xc   : > { %668 = vmatprep.subr.bf16.mxu0 %v765_v0  ;;  %670 = vmatprep.mubr.msk.bf16.mxu0 %vm766_vm0, %v765_v0  ;;  %s639_s8 = sshll.u32 %s883_s7, 2  ;;  %s778_s23 = smov 8   ;;  %vm574_vm3 = vcmask 130048   ;;  %vm576_vm4 = vcmask 195584   ;;  %vm579_vm5 = vcmask 257024  }
   0xd   : > { %674 = vmatprep.subr.bf16.mxu1 %v765_v0  ;;  %676 = vmatprep.mubr.msk.bf16.mxu1 %vm766_vm0, %v765_v0  ;;  %s107_s11 = scalar_lea.vmem %s880_s0, %s639_s8  ;;  %s779_s24 = smov 16  }
   0xe   : > { %v113_v1 = vld [vmem:[%s107_s11] sm:$0xf]  ;;  %s780_s25 = smov 24   ;;  %s111_s28 = scalar_lea.vmem %s881_s1, %s639_s8 }
   0xf   : > { %v813_v2 = vcombine.low %v113_v1, %v113_v1 }
  0x11   : > { %117 = vrot.lane.b32.xlu0 %v813_v2, %s767_s12  ;;  %179 = vrot.lane.b32.xlu1 %v813_v2, %s768_s13 }
  0x15   : > { %230 = vrot.lane.b32.xlu1 %v813_v2, %s769_s14 }
  0x83   : > { %v118_v3 = vpop.permute.xlu0 %117  ;;  %v180_v11 = vpop.permute.xlu1 %179 }
  0x84   : > { %v124_v4 = vsel %vm119_vm1, %v118_v3, 0  ;;  %v186_v12 = vsel %vm184_vm2, %v180_v11, 0 }
  0x85   : > { %669 = vmatpush3.bf16.xpose.msra.mxu0 %v124_v4  ;;  %675 = vmatpush3.bf16.msra.mxu1 %v186_v12 }
  0x86   : > { %686 = vmatprep.subr.bf16.mxu0 %v765_v0  ;;  %680 = vmatprep.subr.bf16.mxu1 %v765_v0 }
  0x87   : > { %v231_v18 = vpop.permute.xlu1 %230 }
  0x88   : > { %v236_v24 = vsel %vm119_vm1, %v231_v18, 0 }
  0x8c   : > { %671 = vmatmul.mubr.msk.bf16.vlgmr.msra.gmra.mxu0 %vm119_vm1, %v113_v1 }
  0x8d   : > { %688 = vmatprep.mubr.msk.bf16.mxu0 %vm766_vm0, %v765_v0 }
 0x14c   : > { %v160_v5 = vpop.f32.mrf.mxu0 }
 0x14d   : > { %v166_v6 = vmul.f32 0.35355338, %v160_v5 }
 0x14e   : > { %v672_v7 = vpop.f32.mrf.mxu0 }
 0x14f   : > { %v167_v8 = vsel %vm119_vm1, %v166_v6, -inf }
 0x150   : > { %168 = vmax.xlane.f32.xlu0 %v167_v8  ;;  %v163_v9 = vpop.f32.mrf.mxu0 }
 0x152   : > { %v673_v10 = vpop.f32.mrf.mxu0 }
 0x166   : > { %452 = vrot.lane.b32.xlu0 %v813_v2, %s770_s15 }
 0x1d9   : > { %v169_v13 = vpop.xlane.xlu0 %168 }
 0x1da   : > { %v170_v14 = vsub.f32 %v166_v6, %v169_v13 }
 0x1dc   : > { %v171_v15 = vmul.f32 1.442695, %v170_v14 }
 0x1dd   : > { %v453_v27 = vpop.permute.xlu0 %452 }
 0x1de   : > { %741 = vpow2.f32 %v171_v15  ;;  %v458_v29 = vsel %vm119_vm1, %v453_v27, 0 }
 0x1eb   : > { %v742_v16 = vpop.eup %741 }
 0x1ec   : > { %v173_v17 = vsel %vm119_vm1, %v742_v16, 0.0 }
 0x1ed   : > { %174 = vadd.xlane.f32.xlu1 %v173_v17 }
 0x1fe   : > { %228 = vrot.lane.b32.xlu1 %v813_v2, %s771_s16 }
 0x202   : > { %341 = vrot.lane.b32.xlu1 %v813_v2, %s772_s17 }
 0x206   : > { %339 = vrot.lane.b32.xlu1 %v813_v2, %s773_s18 }
 0x20a   : > { %450 = vrot.lane.b32.xlu1 %v813_v2, %s774_s19 }
 0x276   : > { %v175_v19 = vpop.xlane.xlu1 %174 }
 0x277   : > { %743 = vrcp.f32 %v175_v19 }
 0x27a   : > { %v229_v22 = vpop.permute.xlu1 %228 }
 0x27e   : > { %v342_v25 = vpop.permute.xlu1 %341 }
 0x27f   : > { %v347_v26 = vsel %vm119_vm1, %v342_v25, 0 }
 0x282   : > { %v340_v28 = vpop.permute.xlu1 %339 }
 0x284   : > { %v744_v20 = vpop.eup %743 }
 0x285   : > { %v177_v21 = vmul.f32 %v744_v20, %v742_v16 }
 0x286   : > { %v451_v30 = vpop.permute.xlu1 %450 }
 0x287   : > { %v178_v23 = vpack.c.bf16 %v177_v21, %v177_v21 }
 0x289   : > { %677 = vmatmul.mubr.msk.bf16.vlgmr.msra.gmra.mxu1 %vm119_vm1, %v178_v23 }
 0x28a   : > { %681 = vmatpush3.bf16.xpose.msra.mxu1 %v236_v24  ;;  %682 = vmatprep.mubr.msk.bf16.mxu1 %vm766_vm0, %v765_v0 }
 0x28b   : > { %692 = vmatprep.subr.bf16.mxu1 %v765_v0 }
 0x291   : > { %683 = vmatmul.mubr.msk.bf16.vlgmr.msra.gmra.mxu1 %vm119_vm1, %v229_v22 }
 0x292   : > { %693 = vmatpush3.bf16.xpose.msra.mxu1 %v347_v26  ;;  %694 = vmatprep.mubr.msk.bf16.mxu1 %vm766_vm0, %v765_v0 }
 0x293   : > { %704 = vmatprep.subr.bf16.mxu1 %v765_v0 }
 0x299   : > { %695 = vmatmul.mubr.msk.bf16.vlgmr.msra.gmra.mxu1 %vm119_vm1, %v340_v28 }
 0x29a   : > { %705 = vmatpush3.bf16.xpose.msra.mxu1 %v458_v29  ;;  %706 = vmatprep.mubr.msk.bf16.mxu1 %vm766_vm0, %v765_v0 }
 0x2a1   : > { %707 = vmatmul.mubr.msk.bf16.vlgmr.msra.gmra.mxu1 %vm119_vm1, %v451_v30 }
 0x349   : > { %v847_v31 = vpop.f32.mrf.mxu1 }
 0x34b   : > { %v678_v32 = vpop.f32.mrf.mxu1 }
 0x34d   : > { %v225_v33 = vpop.f32.mrf.mxu1 }
 0x34f   : > { %v679_v34 = vpop.f32.mrf.mxu1 }
 0x351   : > { %v272_v35 = vpop.f32.mrf.mxu1 }
 0x352   : > { %v278_v36 = vmul.f32 0.35355338, %v272_v35 }
 0x353   : > { %v684_v37 = vpop.f32.mrf.mxu1 }
 0x354   : > { %v279_v38 = vsel %vm119_vm1, %v278_v36, -inf }
 0x355   : > { %280 = vmax.xlane.f32.xlu1 %v279_v38  ;;  %v275_v39 = vpop.f32.mrf.mxu1 }
 0x357   : > { %v685_v40 = vpop.f32.mrf.mxu1 }
 0x359   : > { %v383_v41 = vpop.f32.mrf.mxu1 }
 0x35a   : > { %v389_v42 = vmul.f32 0.35355338, %v383_v41 }
 0x35b   : > { %v696_v43 = vpop.f32.mrf.mxu1 }
 0x35c   : > { %v390_v44 = vsel %vm119_vm1, %v389_v42, -inf }
 0x35d   : > { %391 = vmax.xlane.f32.xlu0 %v390_v44  ;;  %v386_v45 = vpop.f32.mrf.mxu1 }
 0x35f   : > { %v697_v46 = vpop.f32.mrf.mxu1 }
 0x361   : > { %v494_v47 = vpop.f32.mrf.mxu1 }
 0x362   : > { %v500_v48 = vmul.f32 0.35355338, %v494_v47 }
 0x363   : > { %v708_v49 = vpop.f32.mrf.mxu1 }
 0x364   : > { %v501_v50 = vsel %vm119_vm1, %v500_v48, -inf }
 0x365   : > { %502 = vmax.xlane.f32.xlu1 %v501_v50  ;;  %v497_v51 = vpop.f32.mrf.mxu1 }
 0x367   : > { %v709_v52 = vpop.f32.mrf.mxu1 }
 0x3de   : > { %v281_v53 = vpop.xlane.xlu1 %280 }
 0x3df   : > { %v282_v54 = vsub.f32 %v278_v36, %v281_v53 }
 0x3e1   : > { %v283_v55 = vmul.f32 1.442695, %v282_v54 }
 0x3e3   : > { %745 = vpow2.f32 %v283_v55 }
 0x3e6   : > { %v392_v63 = vpop.xlane.xlu0 %391 }
 0x3e7   : > { %v393_v1 = vsub.f32 %v389_v42, %v392_v63 }
 0x3e9   : > { %v394_v3 = vmul.f32 1.442695, %v393_v1 }
 0x3ee   : > { %v503_v56 = vpop.xlane.xlu1 %502 }
 0x3ef   : > { %v504_v57 = vsub.f32 %v500_v48, %v503_v56 }
 0x3f0   : > { %v746_v58 = vpop.eup %745 }
 0x3f1   : > { %v505_v59 = vmul.f32 1.442695, %v504_v57  ;;  %v285_v60 = vsel %vm119_vm1, %v746_v58, 0.0 }
 0x3f2   : > { %286 = vadd.xlane.f32.xlu1 %v285_v60 }
 0x3f3   : > { %747 = vpow2.f32 %v505_v59 }
 0x3f4   : > { %749 = vpow2.f32 %v394_v3 }
 0x400   : > { %v748_v61 = vpop.eup %747 }
 0x401   : > { %v507_v62 = vsel %vm119_vm1, %v748_v61, 0.0  ;;  %v750_v4 = vpop.eup %749 }
 0x402   : > { %508 = vadd.xlane.f32.xlu0 %v507_v62  ;;  %v396_v5 = vsel %vm119_vm1, %v750_v4, 0.0 }
 0x403   : > { %291 = vrot.lane.b32.xlu1 %v813_v2, %s775_s20 }
 0x418   : > { %402 = vrot.lane.b32.xlu0 %v813_v2, %s776_s21 }
 0x427   : > { %397 = vadd.xlane.f32.xlu1 %v396_v5 }
 0x438   : > { %513 = vrot.lane.b32.xlu1 %v813_v2, %s777_s22 }
 0x47b   : > { %v287_v6 = vpop.xlane.xlu1 %286 }
 0x47c   : > { %751 = vrcp.f32 %v287_v6 }
 0x47f   : > { %v292_v7 = vpop.permute.xlu1 %291 }
 0x480   : > { %v297_v8 = vsel %vm184_vm2, %v292_v7, 0 }
 0x481   : > { %687 = vmatpush3.bf16.msra.mxu0 %v297_v8 }
 0x482   : > { %698 = vmatprep.subr.bf16.mxu0 %v765_v0 }
 0x489   : > { %v752_v9 = vpop.eup %751 }
 0x48a   : > { %v289_v10 = vmul.f32 %v752_v9, %v746_v58 }
 0x48b   : > { %v509_v11 = vpop.xlane.xlu0 %508 }
 0x48c   : > { %v290_v12 = vpack.c.bf16 %v289_v10, %v289_v10 }
 0x48e   : > { %689 = vmatmul.mubr.msk.bf16.vlgmr.msra.gmra.mxu0 %vm119_vm1, %v290_v12 }
 0x48f   : > { %v403_v13 = vpop.permute.xlu0 %402  ;;  %700 = vmatprep.mubr.msk.bf16.mxu0 %vm766_vm0, %v765_v0 }
 0x490   : > { %v408_v2 = vsel %vm184_vm2, %v403_v13, 0 }
 0x491   : > { %699 = vmatpush3.bf16.msra.mxu0 %v408_v2 }
 0x492   : > { %710 = vmatprep.subr.bf16.mxu0 %v765_v0 }
 0x4b0   : > { %v398_v14 = vpop.xlane.xlu1 %397 }
 0x4b1   : > { %753 = vrcp.f32 %v398_v14 }
 0x4b2   : > { %755 = vrcp.f32 %v509_v11 }
 0x4b4   : > { %v514_v16 = vpop.permute.xlu1 %513 }
 0x4b5   : > { %v519_v18 = vsel %vm184_vm2, %v514_v16, 0 }
 0x4be   : > { %v754_v15 = vpop.eup %753 }
 0x4bf   : > { %v400_v17 = vmul.f32 %v754_v15, %v750_v4  ;;  %v756_v20 = vpop.eup %755 }
 0x4c0   : > { %v511_v21 = vmul.f32 %v756_v20, %v748_v61 }
 0x4c1   : > { %v401_v19 = vpack.c.bf16 %v400_v17, %v400_v17 }
 0x4c2   : > { %v512_v22 = vpack.c.bf16 %v511_v21, %v511_v21 }
 0x4c3   : > { %701 = vmatmul.mubr.msk.bf16.vlgmr.msra.gmra.mxu0 %vm119_vm1, %v401_v19 }
 0x4c4   : > { %711 = vmatpush3.bf16.msra.mxu0 %v519_v18  ;;  %712 = vmatprep.mubr.msk.bf16.mxu0 %vm766_vm0, %v765_v0 }
 0x4cb   : > { %713 = vmatmul.mubr.msk.bf16.vlgmr.msra.gmra.mxu0 %vm119_vm1, %v512_v22 }
 0x54e   : > { %v333_v23 = vpop.f32.mrf.mxu0 }
 0x54f   : > { %562 = vrot.lane.b32.xlu1 %v333_v23, %s778_s23 }
 0x550   : > { %v690_v24 = vpop.f32.mrf.mxu0 }
 0x552   : > { %v336_v25 = vpop.f32.mrf.mxu0 }
 0x554   : > { %v691_v26 = vpop.f32.mrf.mxu0 }
 0x583   : > { %v444_v27 = vpop.f32.mrf.mxu0 }
 0x584   : > { %566 = vrot.lane.b32.xlu0 %v444_v27, %s779_s24 }
 0x585   : > { %v702_v28 = vpop.f32.mrf.mxu0 }
 0x587   : > { %v447_v29 = vpop.f32.mrf.mxu0 }
 0x589   : > { %v703_v30 = vpop.f32.mrf.mxu0 }
 0x58b   : > { %v555_v32 = vpop.f32.mrf.mxu0 }
 0x58c   : > { %570 = vrot.lane.b32.xlu1 %v555_v32, %s780_s25 }
 0x58d   : > { %v714_v0 = vpop.f32.mrf.mxu0 }
 0x58f   : > { %v558_v33 = vpop.f32.mrf.mxu0 }
 0x591   : > { %v715_v34 = vpop.f32.mrf.mxu0 }
 0x5c1   : > { %v563_v35 = vpop.permute.xlu1 %562 }
 0x5c2   : > { %v573_v37 = vsel %vm119_vm1, %v847_v31, %v563_v35 }
 0x5f6   : > { %v567_v36 = vpop.permute.xlu0 %566 }
 0x5f7   : > { %v575_v38 = vsel %vm574_vm3, %v573_v37, %v567_v36 }
 0x5fe   : > { %v571_v39 = vpop.permute.xlu1 %570 }
 0x5ff   : > { %v577_v40 = vsel %vm576_vm4, %v575_v38, %v571_v39 }
 0x600   : > { %v578_v41 = vpack.c.bf16 %v577_v40, %v577_v40 }
 0x602   : > { %580 = vst.msk [vmem:[%s111_s28] sm:$0xf] %vm579_vm5, %v578_v41 }
 0x603 PF: > { %s11_s6 = sadd.s32 1, %s763_s6  }
 0x604   : > { %p8_p4 = scmp.ge.s32.totalorder %s11_s6, 4  }
 0x606   :  { %10 = sbr.rel (!%p8_p4) target bundleno = 1 (0x1), region = 54 }

// kernel: transformer_encoder_forward.8
= control target key start
LH: loop header
LB: loop body
LE: loop exit
PB: predicated region body
PF: predicated region fallthrough
CT: control target
= control target key end

     0   :  { %vm19_vm0 = vcmask 785408   ;;  %v149_v0 = vmov 0.0   ;;  %vm150_vm1 = vmmov 0   ;;  %vm47_vm2 = vcmask 261120   ;;  %s193_s1 = inlined_call_operand.vmem [shape: bf16[32,96], index: 1, kind: input, shape index: {}]   ;;  %s194_s0 = inlined_call_operand.vmem [shape: bf16[16,32], index: 0, kind: input, shape index: {}]   ;;  %s195_s2 = inlined_call_operand.vmem [shape: bf16[1,96], index: 2, kind: input, shape index: {}]   ;;  %s196_s3 = inlined_call_operand.vmem [shape: bf16[16,96], index: 3, kind: output, shape index: {}]  }
   0x1   :  { %136 = vmatprep.subr.bf16.mxu0 %v149_v0  ;;  %v146_v1 = vld [vmem:[%s193_s1 + $0x8] sm:$0xff]   ;;  %140 = vmatprep.mubr.msk.bf16.mxu0 %vm150_vm1, %v149_v0  ;;  %20 = vst.msk [vmem:[#allocation2] sm:$0xff] %vm19_vm0, %v149_v0  ;;  %21 = vst.msk [vmem:[#allocation2 + $0x8] sm:$0xff] %vm19_vm0, %v149_v0  ;;  %v147_v2 = vld [vmem:[%s193_s1] sm:$0xff]   ;;  %v104_v4 = vlaneseq  ;;  %vm118_vm3 = vcmask 781312  }
   0x2   :  { %137 = vmatpush3.bf16.msra.mxu0 %v146_v1  ;;  %v148_v3 = vld [vmem:[%s194_s0] sm:$0xff]  }
   0x3   :  { %138 = vmatprep.subr.bf16.mxu0 %v149_v0  ;;  %v105_v6 = vshrl.u32 %v104_v4, 7  ;;  %v102_v8 = vld [vmem:[%s195_s2] sm:$0x1] }
   0x4   :  { %v103_v12 = vunpack.c.l.bf16 %v102_v8 }
   0x5   :  { %v106_v13 = vsub.s32 0, %v105_v6 }
   0x6   :  { %139 = vmatpush3.bf16.msra.mxu0 %v147_v2 }
   0x7   :  { %v107_v17 = vrot.slane %v103_v12, %v106_v13 }
   0x8   :  { %v22_v5 = vld [vmem:[#allocation2] sm:$0xff]  ;;  %v23_v11 = vld [vmem:[#allocation2 + $0x8] sm:$0xff] }
   0x9   :  { %141 = vmatmul.mubr.msk.bf16.vlgmr.msra.gmra.mxu0 %vm47_vm2, %v148_v3 }
  0xc9   :  { %v85_v7 = vpop.f32.mrf.mxu0 }
  0xca   :  { %v92_v9 = vadd.f32 %v85_v7, %v22_v5 }
  0xcb   :  { %v142_v10 = vpop.f32.mrf.mxu0 }
  0xcc   :  { %95 = vst.msk [vmem:[#allocation2] sm:$0xff] %vm19_vm0, %v92_v9 }
  0xcd   :  { %v88_v14 = vpop.f32.mrf.mxu0 }
  0xce   :  { %v93_v15 = vadd.f32 %v88_v14, %v23_v11 }
  0xcf   :  { %v143_v16 = vpop.f32.mrf.mxu0 }
  0xd0   :  { %96 = vst.msk [vmem:[#allocation2 + $0x8] sm:$0xff] %vm19_vm0, %v93_v15 }
  0xd3   :  { %v100_v18 = vld [vmem:[#allocation2] sm:$0xff] }
  0xd4   :  { %v108_v19 = vadd.f32 %v107_v17, %v100_v18 }
  0xd6   :  { %v131_v20 = vpack.c.bf16 %v108_v19, %v108_v19 }
  0xd7   :  { %v101_v21 = vld [vmem:[#allocation2 + $0x8] sm:$0xff] }
  0xd8   :  { %119 = vst.msk [vmem:[%s196_s3] sm:$0xf] %vm118_vm3, %v131_v20  ;;  %v109_v22 = vadd.f32 %v107_v17, %v101_v21 }
  0xda   :  { %v132_v23 = vpack.c.bf16 %v109_v22, %v109_v22 }
  0xdc   :  { %120 = vst.msk [vmem:[%s196_s3 + $0x4] sm:$0xf] %vm118_vm3, %v132_v23 }

// kernel: transformer_encoder_forward.10
= control target key start
LH: loop header
LB: loop body
LE: loop exit
PB: predicated region body
PF: predicated region fallthrough
CT: control target
= control target key end

     0   :  { %v194_v0 = vmov 0.0   ;;  %vm195_vm0 = vmmov 0   ;;  %vm53_vm1 = vcmask 261120   ;;  %v32_v4 = vlaneseq  ;;  %s263_s1 = inlined_call_operand.vmem [shape: bf16[32,32], index: 1, kind: input, shape index: {}]   ;;  %s264_s0 = inlined_call_operand.vmem [shape: bf16[16,32], index: 0, kind: input, shape index: {}]   ;;  %s265_s2 = inlined_call_operand.vmem [shape: bf16[1,32], index: 2, kind: input, shape index: {}]   ;;  %s266_s3 = inlined_call_operand.vmem [shape: bf16[16,32], index: 3, kind: input, shape index: {}]   ;;  %s267_s4 = inlined_call_operand.vmem [shape: bf16[1,32], index: 4, kind: input, shape index: {}]   ;;  %s268_s5 = inlined_call_operand.vmem [shape: bf16[1,32], index: 5, kind: input, shape index: {}]   ;;  %s269_s6 = inlined_call_operand.vmem [shape: bf16[16,32], index: 6, kind: output, shape index: {}]  }
   0x1   :  { %177 = vmatprep.subr.bf16.mxu0 %v194_v0  ;;  %v187_v1 = vld [vmem:[%s263_s1 + $0x8] sm:$0xff]   ;;  %181 = vmatprep.mubr.msk.bf16.mxu0 %vm195_vm0, %v194_v0  ;;  %v188_v2 = vld [vmem:[%s263_s1] sm:$0xff]   ;;  %vm155_vm2 = vcmask 257024  }
   0x2   :  { %178 = vmatpush3.bf16.msra.mxu0 %v187_v1  ;;  %v189_v3 = vld [vmem:[%s264_s0] sm:$0xff]   ;;  %v33_v5 = vshrl.u32 %v32_v4, 7 }
   0x3   :  { %179 = vmatprep.subr.bf16.mxu0 %v194_v0  ;;  %v30_v6 = vld [vmem:[%s265_s2] sm:$0x1] }
   0x4   :  { %v31_v7 = vunpack.c.l.bf16 %v30_v6  ;;  %v34_v8 = vsub.s32 0, %v33_v5  ;;  %v171_v9 = vld [vmem:[%s266_s3] sm:$0xff]  }
   0x5   :  { %v172_v11 = vunpack.c.l.bf16 %v171_v9  ;;  %v173_v16 = vunpack.c.h.bf16 %v171_v9  ;;  %v131_v39 = vld [vmem:[%s267_s4] sm:$0x1] }
   0x6   :  { %180 = vmatpush3.bf16.msra.mxu0 %v188_v2  ;;  %v35_v10 = vrot.slane %v31_v7, %v34_v8  ;;  %v139_v40 = vld [vmem:[%s268_s5] sm:$0x1]  ;;  %v132_v41 = vunpack.c.l.bf16 %v131_v39 }
   0x7   :  { %v140_v42 = vunpack.c.l.bf16 %v139_v40 }
   0x8   :  { %v136_v43 = vrot.slane %v132_v41, %v34_v8 }
   0x9   :  { %182 = vmatmul.mubr.msk.bf16.vlgmr.msra.gmra.mxu0 %vm53_vm1, %v189_v3  ;;  %v144_v45 = vrot.slane %v140_v42, %v34_v8 }
  0xc9   :  { %v91_v12 = vpop.f32.mrf.mxu0 }
  0xca   :  { %v92_v13 = vadd.f32 %v91_v12, %v35_v10 }
  0xcb   :  { %v183_v14 = vpop.f32.mrf.mxu0 }
  0xcc   :  { %v102_v15 = vadd.f32 %v172_v11, %v92_v13 }
  0xcd   :  { %v94_v17 = vpop.f32.mrf.mxu0 }
  0xce   :  { %v95_v18 = vadd.f32 %v94_v17, %v35_v10  ;;  %v104_v19 = vsel %vm53_vm1, %v102_v15, 0.0 }
  0xcf   :  { %105 = vadd.xlane.f32.xlu0 %v104_v19  ;;  %v184_v20 = vpop.f32.mrf.mxu0 }
  0xd0   :  { %v103_v21 = vadd.f32 %v173_v16, %v95_v18 }
  0xd2   :  { %v107_v22 = vsel %vm53_vm1, %v103_v21, 0.0 }
  0xd3   :  { %108 = vadd.xlane.f32.xlu0 %v107_v22 }
 0x158   :  { %v106_v23 = vpop.xlane.xlu0 %105 }
 0x159   :  { %v111_v24 = vmul.f32 0.03125, %v106_v23 }
 0x15b   :  { %v113_v25 = vsub.f32 %v102_v15, %v111_v24 }
 0x15c   :  { %v109_v26 = vpop.xlane.xlu0 %108 }
 0x15d   :  { %v112_v27 = vmul.f32 0.03125, %v109_v26  ;;  %v115_v28 = vmul.f32 %v113_v25, %v113_v25 }
 0x15f   :  { %v114_v29 = vsub.f32 %v103_v21, %v112_v27  ;;  %v117_v30 = vsel %vm53_vm1, %v115_v28, 0.0 }
 0x160   :  { %118 = vadd.xlane.f32.xlu1 %v117_v30 }
 0x161   :  { %v116_v31 = vmul.f32 %v114_v29, %v114_v29 }
 0x163   :  { %v120_v32 = vsel %vm53_vm1, %v116_v31, 0.0 }
 0x164   :  { %121 = vadd.xlane.f32.xlu1 %v120_v32 }
 0x1e9   :  { %v119_v33 = vpop.xlane.xlu1 %118 }
 0x1ea   :  { %v123_v34 = vmul.f32 0.03125, %v119_v33 }
 0x1ec   :  { %v125_v35 = vadd.f32 1e-05, %v123_v34 }
 0x1ed   :  { %v122_v36 = vpop.xlane.xlu1 %121 }
 0x1ee   :  { %190 = vrsqrt.f32 %v125_v35  ;;  %v124_v37 = vmul.f32 0.03125, %v122_v36 }
 0x1f0   :  { %v126_v38 = vadd.f32 1e-05, %v124_v37 }
 0x1f2   :  { %192 = vrsqrt.f32 %v126_v38 }
 0x1fb   :  { %v191_v44 = vpop.eup %190 }
 0x1fc   :  { %v129_v46 = vmul.f32 %v191_v44, %v113_v25 }
 0x1fe   :  { %v137_v47 = vmul.f32 %v136_v43, %v129_v46 }
 0x1ff   :  { %v193_v48 = vpop.eup %192 }
 0x200   :  { %v145_v49 = vadd.f32 %v144_v45, %v137_v47  ;;  %v130_v50 = vmul.f32 %v193_v48, %v114_v29 }
 0x202   :  { %v168_v51 = vpack.c.bf16 %v145_v49, %v145_v49  ;;  %v138_v52 = vmul.f32 %v136_v43, %v130_v50 }
 0x204   :  { %156 = vst.msk [vmem:[%s269_s6] sm:$0xf] %vm155_vm2, %v168_v51  ;;  %v146_v53 = vadd.f32 %v144_v45, %v138_v52 }
 0x206   :  { %v169_v54 = vpack.c.bf16 %v146_v53, %v146_v53 }
 0x208   :  { %157 = vst.msk [vmem:[%s269_s6 + $0x4] sm:$0xf] %vm155_vm2, %v169_v54 }

// kernel: transformer_encoder_forward.11
= control target key start
LH: loop header
LB: loop body
LE: loop exit
PB: predicated region body
PF: predicated region fallthrough
CT: control target
= control target key end

     0   :  { %vm31_vm0 = vcmask 261120   ;;  %v329_v0 = vmov 0.0   ;;  %vm330_vm1 = vmmov 0   ;;  %v42_v8 = vlaneseq  ;;  %s428_s1 = inlined_call_operand.vmem [shape: bf16[32,64], index: 1, kind: input, shape index: {}]   ;;  %s429_s3 = inlined_call_operand.vmem [shape: bf16[64,32], index: 3, kind: input, shape index: {}]   ;;  %s430_s0 = inlined_call_operand.vmem [shape: bf16[16,32], index: 0, kind: input, shape index: {}]   ;;  %s431_s2 = inlined_call_operand.vmem [shape: bf16[1,64], index: 2, kind: input, shape index: {}]   ;;  %s432_s4 = inlined_call_operand.vmem [shape: bf16[1,32], index: 4, kind: input, shape index: {}]   ;;  %s433_s5 = inlined_call_operand.vmem [shape: bf16[1,32], index: 5, kind: input, shape index: {}]   ;;  %s434_s6 = inlined_call_operand.vmem [shape: bf16[1,32], index: 6, kind: input, shape index: {}]   ;;  %s435_s7 = inlined_call_operand.vmem [shape: bf16[16,32], index: 7, kind: output, shape index: {}]  }
   0x1   :  { %296 = vmatprep.subr.bf16.mxu0 %v329_v0  ;;  %v318_v1 = vld [vmem:[%s428_s1 + $0x8] sm:$0xff]   ;;  %300 = vmatprep.mubr.msk.bf16.mxu0 %vm330_vm1, %v329_v0  ;;  %32 = vst.msk [vmem:[#allocation2] sm:$0xff] %vm31_vm0, %v329_v0  ;;  %33 = vst.msk [vmem:[#allocation2 + $0x8] sm:$0xff] %vm31_vm0, %v329_v0  ;;  %v319_v2 = vld [vmem:[%s428_s1] sm:$0xff]   ;;  %vm145_vm2 = vcmask 523264   ;;  %vm264_vm3 = vcmask 257024  }
   0x2   :  { %304 = vmatprep.subr.bf16.mxu1 %v329_v0  ;;  %312 = vmatprep.mubr.msk.bf16.mxu1 %vm330_vm1, %v329_v0  ;;  %v321_v3 = vld [vmem:[%s429_s3 + $0x18] sm:$0xff]   ;;  %v320_v4 = vld [vmem:[%s430_s0] sm:$0xff]   ;;  %v322_v5 = vld [vmem:[%s429_s3 + $0x10] sm:$0xff]   ;;  %v43_v9 = vshrl.u32 %v42_v8, 7 }
   0x3   :  { %297 = vmatpush3.bf16.msra.mxu0 %v318_v1  ;;  %305 = vmatpush3.bf16.msra.mxu1 %v321_v3  ;;  %v323_v6 = vld [vmem:[%s429_s3 + $0x8] sm:$0xff]   ;;  %v324_v7 = vld [vmem:[%s429_s3] sm:$0xff]  }
   0x4   :  { %298 = vmatprep.subr.bf16.mxu0 %v329_v0  ;;  %306 = vmatprep.subr.bf16.mxu1 %v329_v0  ;;  %v40_v10 = vld [vmem:[%s431_s2] sm:$0x1]  ;;  %v398_v12 = vsub.s32 0, %v43_v9 }
   0x5   :  { %v41_v11 = vunpack.c.l.bf16 %v40_v10  ;;  %v199_v25 = vld [vmem:[%s432_s4] sm:$0x1] }
   0x6   :  { %v200_v29 = vunpack.c.l.bf16 %v199_v25  ;;  %v285_v33 = vld [vmem:[%s430_s0] sm:$0xff]  }
   0x7   :  { %299 = vmatpush3.bf16.msra.mxu0 %v319_v2  ;;  %307 = vmatpush3.bf16.msra.mxu1 %v322_v5  ;;  %v45_v13 = vrot.slane %v41_v11, %v398_v12  ;;  %v286_v35 = vunpack.c.l.bf16 %v285_v33  ;;  %v287_v39 = vunpack.c.h.bf16 %v285_v33  ;;  %v240_v61 = vld [vmem:[%s433_s5] sm:$0x1] }
   0x8   :  { %308 = vmatprep.subr.bf16.mxu1 %v329_v0  ;;  %v110_v23 = vld [vmem:[#allocation2] sm:$0xff]  ;;  %v111_v28 = vld [vmem:[#allocation2 + $0x8] sm:$0xff]  ;;  %v204_v34 = vrot.slane %v200_v29, %v398_v12  ;;  %v241_v63 = vunpack.c.l.bf16 %v240_v61 }
   0x9   :  { %v248_v62 = vld [vmem:[%s434_s6] sm:$0x1] }
   0xa   :  { %301 = vmatmul.mubr.msk.bf16.vlgmr.msra.gmra.mxu0 %vm31_vm0, %v320_v4  ;;  %v245_v1 = vrot.slane %v241_v63, %v398_v12 }
   0xb   :  { %309 = vmatpush3.bf16.msra.mxu1 %v323_v6 }
   0xc   :  { %310 = vmatprep.subr.bf16.mxu1 %v329_v0  ;;  %v249_v0 = vunpack.c.l.bf16 %v248_v62 }
   0xe   :  { %v253_v3 = vrot.slane %v249_v0, %v398_v12 }
   0xf   :  { %311 = vmatpush3.bf16.msra.mxu1 %v324_v7 }
  0xca   :  { %v101_v14 = vpop.f32.mrf.mxu0 }
  0xcb   :  { %v102_v16 = vadd.f32 %v101_v14, %v45_v13 }
  0xcc   :  { %v302_v15 = vpop.f32.mrf.mxu0 }
  0xcd   :  { %v108_v20 = vmax.f32 %v102_v16, 0.0 }
  0xce   :  { %v104_v17 = vpop.f32.mrf.mxu0 }
  0xcf   :  { %v105_v18 = vadd.f32 %v104_v17, %v45_v13 }
  0xd0   :  { %v303_v19 = vpop.f32.mrf.mxu0 }
  0xd1   :  { %v109_v21 = vmax.f32 %v105_v18, 0.0 }
  0xd3   :  { %v112_v22 = vpack.c.bf16 %v109_v21, %v108_v20 }
  0xd5   :  { %313 = vmatmul.mubr.msk.bf16.vlgmr.msra.gmra.mxu1 %vm145_vm2, %v112_v22 }
 0x195   :  { %v183_v24 = vpop.f32.mrf.mxu1 }
 0x196   :  { %v190_v26 = vadd.f32 %v183_v24, %v110_v23 }
 0x197   :  { %v314_v27 = vpop.f32.mrf.mxu1 }
 0x198   :  { %192 = vst.msk [vmem:[#allocation2] sm:$0xff] %vm31_vm0, %v190_v26 }
 0x199   :  { %v186_v30 = vpop.f32.mrf.mxu1 }
 0x19a   :  { %v191_v31 = vadd.f32 %v186_v30, %v111_v28 }
 0x19b   :  { %v315_v32 = vpop.f32.mrf.mxu1 }
 0x19c   :  { %193 = vst.msk [vmem:[#allocation2 + $0x8] sm:$0xff] %vm31_vm0, %v191_v31 }
 0x19f   :  { %v197_v36 = vld [vmem:[#allocation2] sm:$0xff] }
 0x1a0   :  { %v205_v37 = vadd.f32 %v204_v34, %v197_v36 }
 0x1a2   :  { %v211_v38 = vadd.f32 %v286_v35, %v205_v37 }
 0x1a3   :  { %v198_v40 = vld [vmem:[#allocation2 + $0x8] sm:$0xff] }
 0x1a4   :  { %v213_v41 = vsel %vm31_vm0, %v211_v38, 0.0  ;;  %v206_v42 = vadd.f32 %v204_v34, %v198_v40 }
 0x1a5   :  { %214 = vadd.xlane.f32.xlu0 %v213_v41 }
 0x1a6   :  { %v212_v43 = vadd.f32 %v287_v39, %v206_v42 }
 0x1a8   :  { %v216_v44 = vsel %vm31_vm0, %v212_v43, 0.0 }
 0x1a9   :  { %217 = vadd.xlane.f32.xlu0 %v216_v44 }
 0x22e   :  { %v215_v45 = vpop.xlane.xlu0 %214 }
 0x22f   :  { %v220_v46 = vmul.f32 0.03125, %v215_v45 }
 0x231   :  { %v222_v47 = vsub.f32 %v211_v38, %v220_v46 }
 0x232   :  { %v218_v48 = vpop.xlane.xlu0 %217 }
 0x233   :  { %v221_v49 = vmul.f32 0.03125, %v218_v48  ;;  %v224_v50 = vmul.f32 %v222_v47, %v222_v47 }
 0x235   :  { %v223_v51 = vsub.f32 %v212_v43, %v221_v49  ;;  %v226_v52 = vsel %vm31_vm0, %v224_v50, 0.0 }
 0x236   :  { %227 = vadd.xlane.f32.xlu1 %v226_v52 }
 0x237   :  { %v225_v53 = vmul.f32 %v223_v51, %v223_v51 }
 0x239   :  { %v229_v54 = vsel %vm31_vm0, %v225_v53, 0.0 }
 0x23a   :  { %230 = vadd.xlane.f32.xlu1 %v229_v54 }
 0x2bf   :  { %v228_v55 = vpop.xlane.xlu1 %227 }
 0x2c0   :  { %v232_v56 = vmul.f32 0.03125, %v228_v55 }
 0x2c2   :  { %v234_v57 = vadd.f32 1e-05, %v232_v56 }
 0x2c3   :  { %v231_v58 = vpop.xlane.xlu1 %230 }
 0x2c4   :  { %325 = vrsqrt.f32 %v234_v57  ;;  %v233_v59 = vmul.f32 0.03125, %v231_v58 }
 0x2c6   :  { %v235_v60 = vadd.f32 1e-05, %v233_v59 }
 0x2c8   :  { %327 = vrsqrt.f32 %v235_v60 }
 0x2d1   :  { %v326_v2 = vpop.eup %325 }
 0x2d2   :  { %v238_v4 = vmul.f32 %v326_v2, %v222_v47 }
 0x2d4   :  { %v246_v5 = vmul.f32 %v245_v1, %v238_v4 }
 0x2d5   :  { %v328_v6 = vpop.eup %327 }
 0x2d6   :  { %v254_v7 = vadd.f32 %v253_v3, %v246_v5  ;;  %v239_v8 = vmul.f32 %v328_v6, %v223_v51 }
 0x2d8   :  { %v282_v9 = vpack.c.bf16 %v254_v7, %v254_v7  ;;  %v247_v10 = vmul.f32 %v245_v1, %v239_v8 }
 0x2da   :  { %265 = vst.msk [vmem:[%s435_s7] sm:$0xf] %vm264_vm3, %v282_v9  ;;  %v255_v11 = vadd.f32 %v253_v3, %v247_v10 }
 0x2dc   :  { %v283_v13 = vpack.c.bf16 %v255_v11, %v255_v11 }
 0x2de   :  { %266 = vst.msk [vmem:[%s435_s7 + $0x4] sm:$0xf] %vm264_vm3, %v283_v13 }

</bundles_post_ra>
